<compile_context>
chip_gen: v7x
topology: tpu7x:2x2x1
jax: 0.10.0
libtpu: 0.0.40
codegen_flags: <defaults>
</compile_context>

<pallas_src>
import functools

import jax
import jax.numpy as jnp
from jax.experimental import pallas as pl
from jax.experimental.pallas import tpu as pltpu

X, Y, H, W = 0, 1, 2, 3

_LANE = 128
_MAX_TILE = 32768  # lanes per grid step -> 16*32768*4 B = 2 MiB/block, 4 MiB double-buffered


def _round_up(n, m):
    return ((n + m - 1) // m) * m


def _smooth_l1_kernel(data_ref, o_ref):
    """One lane-tile of the fused smooth-L1 box-regression loss.

    data_ref : (16, T) f32
        rows  0- 3 : out[X, Y, H, W]
        rows  4- 7 : gt [X, Y, H, W]
        rows  8-15 : roi[X, Y, W, H], roi[X, Y, W, H]   (aux)
    o_ref    : (1, 1) f32 SMEM partial sum for this core (indexed by the parallel id)
    """
    i = pl.program_id(1)

    @pl.when(i == 0)
    def _():
        o_ref[0, 0] = jnp.float32(0.0)

    boxes = data_ref[0:8, :]                        # vreg-aligned static slices
    aux = data_ref[8:16, :]                         # [X, Y, W, H, X, Y, W, H]
    den = pltpu.roll(aux, shift=6, axis=0)          # [W, H, ., ., W, H, ., .]  (XLU slot)

    inv = pl.reciprocal(den, approx=True)           # EUP vrcp, keeps VALU free
    lin = (boxes - aux) * inv                       # (b - roi_xy) / roi_wh  (rows 0,1,4,5)
    lg = jnp.log(boxes)                             # roi denominator cancels in out - gt

    row = jax.lax.broadcasted_iota(jnp.int32, (8, 1), 0)   # sublane-only mask pattern
    t = jnp.where((row & 3) < 2, lin, lg)           # coords X,Y linear; H,W log

    d = t - pltpu.roll(t, shift=4, axis=0)          # out-targets minus gt-targets (both ways)
    ad = jnp.abs(d)
    m = jnp.minimum(ad, 1.0)
    hub = 0.5 * m * (2.0 * ad - m)                  # == where(ad<1, .5*ad^2, ad-.5), no select
    o_ref[0, 0] += jnp.sum(hub)                     # single cross-lane reduce per tile


@functools.partial(jax.jit, static_argnames=("lamb", "reduce"))
def smooth_l1_loss(out, gt, roi, norm, *, lamb, reduce=False):
    # `norm` and `reduce` are unused by the reference forward; kept for API parity.
    del norm, reduce
    k = int(out.shape[0])
    # TODO(synk): k == 0 returns 0.0 here whereas torch's mean over an empty tensor is NaN.
    kpad_min = _round_up(max(k, 1), _LANE)
    tile = min(kpad_min, _MAX_TILE)
    n_par = 2 if kpad_min > tile else 1             # split lanes across both v7x TCs for large K
    inner = pl.cdiv(kpad_min, n_par * tile)
    kpad = n_par * inner * tile

    out_f = jnp.asarray(out, jnp.float32)
    gt_f = jnp.asarray(gt, jnp.float32)
    roi_f = jnp.asarray(roi, jnp.float32)

    # Single concatenate (static column slices only); transpose + pad fuse under jit.
    # Padding with 1.0 keeps log()/reciprocal finite and makes every padded lane
    # contribute exactly 0 (lin = 0, log(1) = 0 on both halves).
    data = jnp.concatenate(
        [out_f, gt_f,
         roi_f[:, X:Y + 1], roi_f[:, W:W + 1], roi_f[:, H:H + 1],
         roi_f[:, X:Y + 1], roi_f[:, W:W + 1], roi_f[:, H:H + 1]],
        axis=1).T                                   # (16, K)
    data = jnp.pad(data, ((0, 0), (0, kpad - k)), constant_values=1.0)

    block_bytes = 16 * tile * 4
    partials = pl.pallas_call(
        _smooth_l1_kernel,
        out_shape=jax.ShapeDtypeStruct((1, n_par), jnp.float32),
        grid_spec=pltpu.PrefetchScalarGridSpec(
            num_scalar_prefetch=0,
            grid=(n_par, inner),
            in_specs=[pl.BlockSpec((16, tile), lambda p, i: (0, p * inner + i))],
            out_specs=pl.BlockSpec((1, 1), lambda p, i: (0, p),
                                   memory_space=pltpu.SMEM),
        ),
        compiler_params=pltpu.CompilerParams(
            # Per-core partial sums carried across the inner lane axis.
            dimension_semantics=("parallel", "arbitrary"),
            vmem_limit_bytes=int(max(16 << 20, 4 * block_bytes)),
        ),
        cost_estimate=pl.CostEstimate(
            flops=12 * 8 * kpad,
            transcendentals=2 * 8 * kpad,           # log + approx reciprocal
            bytes_accessed=16 * kpad * 4 + 4 * n_par,
        ),
    )(data)

    # Each (out, gt) pair appears twice via the roll -> /(8*k) gives the
    # SmoothL1Loss(reduction='mean') over the 4*k target elements.
    return jnp.sum(partials) * jnp.float32(lamb / (8.0 * max(k, 1)))


def _reference(out, gt, roi, lamb):
    t_x = (out[:, X] - roi[:, X]) / roi[:, W]
    t_y = (out[:, Y] - roi[:, Y]) / roi[:, H]
    t_w = jnp.log(out[:, W] / roi[:, W])
    t_h = jnp.log(out[:, H] / roi[:, H])
    g_x = (gt[:, X] - roi[:, X]) / roi[:, W]
    g_y = (gt[:, Y] - roi[:, Y]) / roi[:, H]
    g_w = jnp.log(gt[:, W] / roi[:, W])
    g_h = jnp.log(gt[:, H] / roi[:, H])
    t = jnp.stack((t_x, t_y, t_h, t_w))
    g = jnp.stack((g_x, g_y, g_h, g_w))
    d = jnp.abs(t - g)
    l = jnp.where(d < 1.0, 0.5 * d * d, d - 0.5)
    return lamb * jnp.mean(l)


if __name__ == "__main__":
    LAMB = 1.5
    key = jax.random.PRNGKey(0)

    for K in (8, 300):   # small case + non-multiple-of-128 padding case
        k_out, k_gt, k_roi, key = jax.random.split(key, 4)
        # Positive coordinates/sizes so log() is well defined (as the module assumes).
        out = jax.random.uniform(k_out, (K, 4), jnp.float32, 0.5, 2.5)
        gt = jax.random.uniform(k_gt, (K, 4), jnp.float32, 0.5, 2.5)
        roi = jax.random.uniform(k_roi, (K, 4), jnp.float32, 0.5, 2.5)
        norm = jnp.float32(K)

        loss = smooth_l1_loss(out, gt, roi, norm, lamb=LAMB)
        loss = jax.block_until_ready(loss)

        ref = _reference(out, gt, roi, LAMB)
        # approx reciprocal (vrcp) introduces up to ~5e-4 relative error vs true division.
        assert jnp.allclose(loss, ref, rtol=3e-3, atol=1e-4), (K, loss, ref)

    print("KERNEL_OK")
</pallas_src>

<mosaic_0001>
module attributes {stable_mosaic.version = 11 : i64} {
  func.func @_smooth_l1_kernel(%arg0: i32, %arg1: i32, %arg2: memref<16x128xf32, #tpu.memory_space<vmem>>, %arg3: memref<1x1xf32, #tpu.memory_space<smem>>) attributes {dimension_semantics = [#tpu.dimension_semantics<parallel>, #tpu.dimension_semantics<arbitrary>], iteration_bounds = array<i64: 1, 1>, scalar_prefetch = 0 : i64, scratch_operands = 0 : i64, tpu.core_type = #tpu.core_type<tc>, window_params = [{transform_indices = @transform_0, window_bounds = array<i64: 16, 128>}, {transform_indices = @transform_1, window_bounds = array<i64: 1, 1>}]} {
    %c0_i32 = arith.constant 0 : i32
    %0 = arith.cmpi eq, %arg1, %c0_i32 : i32
    %1 = arith.extui %0 : i1 to i32
    %c0_i32_0 = arith.constant 0 : i32
    %2 = arith.cmpi ne, %1, %c0_i32_0 : i32
    scf.if %2 {
      %cst_10 = arith.constant 0.000000e+00 : f32
      %c0_11 = arith.constant 0 : index
      %c0_12 = arith.constant 0 : index
      %36 = memref.load %arg3[%c0_11, %c0_12] : memref<1x1xf32, #tpu.memory_space<smem>>
      memref.store %cst_10, %arg3[%c0_11, %c0_12] : memref<1x1xf32, #tpu.memory_space<smem>>
    } else {
    }
    %c0 = arith.constant 0 : index
    %c0_1 = arith.constant 0 : index
    %3 = vector.load %arg2[%c0, %c0_1] : memref<16x128xf32, #tpu.memory_space<vmem>>, vector<8x128xf32>
    %c8 = arith.constant 8 : index
    %c0_2 = arith.constant 0 : index
    %4 = vector.load %arg2[%c8, %c0_2] : memref<16x128xf32, #tpu.memory_space<vmem>>, vector<8x128xf32>
    %c6_i32 = arith.constant 6 : i32
    %5 = tpu.dynamic_rotate %4 by %c6_i32 dim 0 : vector<8x128xf32>, i32 -> vector<8x128xf32>
    %6 = tpu.reciprocal %5 {approx = true} : vector<8x128xf32> -> vector<8x128xf32>
    %7 = arith.subf %3, %4 : vector<8x128xf32>
    %8 = arith.mulf %7, %6 : vector<8x128xf32>
    %9 = math.log %3 : vector<8x128xf32>
    %10 = tpu.iota {dimensions = array<i32: 0>} : vector<8x1xi32>
    %c3_i32 = arith.constant 3 : i32
    %11 = vector.broadcast %c3_i32 : i32 to vector<8x1xi32>
    %12 = arith.andi %10, %11 : vector<8x1xi32>
    %c2_i32 = arith.constant 2 : i32
    %13 = vector.broadcast %c2_i32 : i32 to vector<8x1xi32>
    %14 = arith.cmpi slt, %12, %13 : vector<8x1xi32>
    %15 = vector.shape_cast %14 : vector<8x1xi1> to vector<8x1xi1>
    %16 = vector.broadcast %15 : vector<8x1xi1> to vector<8x128xi1>
    %17 = arith.select %16, %8, %9 : vector<8x128xi1>, vector<8x128xf32>
    %c4_i32 = arith.constant 4 : i32
    %18 = tpu.dynamic_rotate %17 by %c4_i32 dim 0 : vector<8x128xf32>, i32 -> vector<8x128xf32>
    %19 = arith.subf %17, %18 : vector<8x128xf32>
    %20 = math.absf %19 : vector<8x128xf32>
    %cst = arith.constant 1.000000e+00 : f32
    %21 = vector.broadcast %cst : f32 to vector<8x128xf32>
    %22 = arith.minimumf %20, %21 : vector<8x128xf32>
    %cst_3 = arith.constant 5.000000e-01 : f32
    %23 = vector.broadcast %cst_3 : f32 to vector<8x128xf32>
    %24 = arith.mulf %23, %22 : vector<8x128xf32>
    %cst_4 = arith.constant 2.000000e+00 : f32
    %25 = vector.broadcast %cst_4 : f32 to vector<8x128xf32>
    %26 = arith.mulf %25, %20 : vector<8x128xf32>
    %27 = arith.subf %26, %22 : vector<8x128xf32>
    %28 = arith.mulf %24, %27 : vector<8x128xf32>
    %c0_5 = arith.constant 0 : index
    %c0_6 = arith.constant 0 : index
    %29 = memref.load %arg3[%c0_5, %c0_6] : memref<1x1xf32, #tpu.memory_space<smem>>
    %30 = vector.shape_cast %28 : vector<8x128xf32> to vector<1x8x128xf32>
    %cst_7 = arith.constant dense<0.000000e+00> : vector<1xf32>
    %31 = vector.multi_reduction <add>, %30, %cst_7 [1, 2] : vector<1x8x128xf32> to vector<1xf32>
    %32 = vector.shape_cast %31 : vector<1xf32> to vector<1x1x1xf32>
    %33 = vector.extract %32[0, 0, 0] : f32 from vector<1x1x1xf32>
    %34 = arith.addf %29, %33 : f32
    %c0_8 = arith.constant 0 : index
    %c0_9 = arith.constant 0 : index
    %35 = memref.load %arg3[%c0_8, %c0_9] : memref<1x1xf32, #tpu.memory_space<smem>>
    memref.store %34, %arg3[%c0_8, %c0_9] : memref<1x1xf32, #tpu.memory_space<smem>>
    return
  }
  func.func @transform_0(%arg0: i32, %arg1: i32) -> (i32, i32) {
    %c1_i32 = arith.constant 1 : i32
    %0 = arith.muli %arg0, %c1_i32 : i32
    %1 = arith.addi %0, %arg1 : i32
    %c0_i32 = arith.constant 0 : i32
    %c0_i32_0 = arith.constant 0 : i32
    return %c0_i32, %1 : i32, i32
  }
  func.func @transform_1(%arg0: i32, %arg1: i32) -> (i32, i32) {
    %c0_i32 = arith.constant 0 : i32
    %c0_i32_0 = arith.constant 0 : i32
    return %c0_i32, %arg0 : i32, i32
  }
}

</mosaic_0001>

<bundles_post_ra>
// kernel: smooth_l1_loss.1
= control target key start
LH: loop header
LB: loop body
LE: loop exit
PB: predicated region body
PF: predicated region fallthrough
CT: control target
= control target key end

     0   :  { %s136_s0 = inlined_call_operand.vmem [shape: f32[16,128], index: 0, kind: input, shape index: {}]   ;;  %s137_s1 = inlined_call_operand.hbm [shape: f32[1,1], index: 1, kind: output, shape index: {}]  }
   0x1   :  { %v32_v0 = vld [vmem:[%s136_s0] sm:$0xff]  ;;  %v33_v1 = vld [vmem:[%s136_s0 + $0x8] sm:$0xff] }
   0x2   :  { %6 = vsyncpa [#allocation3], 0  ;;  %v34_v2 = vrot.slane %v33_v1, 2  ;;  %91 = vlog2.f32 %v32_v0  ;;  %v40_v3 = vlaneseq  ;;  %v36_v6 = vsub.f32 %v32_v0, %v33_v1  ;;  %s95_s12 = scalar_lea.hbm %s137_s1, 16 }
   0x3   :  { %p96_p0 = scmp.ne.s32.totalorder %s137_s1, %s95_s12  ;;  %p99_p1 = scmp.lt.u32.totalorder %s95_s12, %s137_s1 }
   0x4   :  { %93 = vrcp.f32 %v34_v2  ;;  %v41_v4 = vshrl.u32 %v40_v3, 7 }
   0x5   :  { %p101_p2 = pnand %p99_p1, %p96_p0 }
   0x6   :  { %v42_v5 = vand.u32 3, %v41_v4 }
   0x8   :  { %vm43_vm0 = vcmp.lt.s32.totalorder %v42_v5, 2 }
   0xc   :  { %v92_v7 = vpop.eup %91 }
   0xd   :  { %v39_v8 = vmul.f32 0.6931472, %v92_v7 }
   0xe   :  { %v94_v9 = vpop.eup %93 }
   0xf   :  { %v37_v10 = vmul.f32 %v94_v9, %v36_v6 }
  0x11   :  { %v46_v11 = vsel %vm43_vm0, %v37_v10, %v39_v8 }
  0x12   :  { %v47_v12 = vrot.slane %v46_v11, 4 }
  0x14   :  { %v48_v13 = vsub.f32 %v46_v11, %v47_v12 }
  0x16   :  { %v49_v14 = vand.u32 2147483647, %v48_v13 }
  0x18   :  { %v50_v15 = vmin.f32 %v49_v14, 1.0  ;;  %v52_v16 = vmul.f32 2.0, %v49_v14 }
  0x1a   :  { %v51_v17 = vmul.f32 0.5, %v50_v15  ;;  %v53_v18 = vsub.f32 %v52_v16, %v50_v15 }
  0x1c   :  { %v54_v19 = vmul.f32 %v53_v18, %v51_v17 }
  0x1e   :  { %56 = vadd.xlane.f32.xlu0 %v54_v19 }
  0xab   :  { %v57_v20 = vpop.xlane.xlu0 %56 }
  0xac   :  { %v58_v21 = vrot.slane %v57_v20, 4 }
  0xae   :  { %v59_v22 = vadd.f32 %v58_v21, %v57_v20 }
  0xb0   :  { %v60_v23 = vrot.slane %v59_v22, 2 }
  0xb2   :  { %v61_v24 = vadd.f32 %v60_v23, %v59_v22 }
  0xb4   :  { %v62_v25 = vrot.slane %v61_v24, 1 }
  0xb6   :  { %v63_v26 = vadd.f32 %v62_v25, %v61_v24 }
  0xb8   :  { %87 = vpush %v63_v26 }
  0xe9   :  { %s88_s0 = spop %87 }
  0xea   :  { %67 = sst [smem:[#allocation2]] %s88_s0 }
  0xeb   :  { %104 = shalt.err (!%p101_p2)
}
  0xec   :  { %s107_s17 = smov [#allocation2]  }
  0xed   :  { %75 = dma.smem_to_hbm %s107_s17, 16, %s137_s1, [#allocation3]  }
  0xee   :  { %105 = dma.done.wait [#allocation3], 16  }
  0xef   :  { %106 = vsyncadd [#allocation3], 4294967280 }
  0xf0   :  { %79 = sfence }
  0xf1   :  { %80 = vsyncpa [#allocation3], 1 }

</bundles_post_ra>
